<compile_context>
chip_gen: v6e
topology: v6e:2x2x1
jax: 0.10.0
libtpu: 0.0.40
codegen_flags: <defaults>
</compile_context>

<pallas_src>
import jax
import jax.numpy as jnp
from jax.experimental import pallas as pl
from jax.experimental.pallas import tpu as pltpu


def _diag1_kernel(cs_ref, xr_ref, xi_ref, or_ref, oi_ref):
    # cs_ref: (Ft, 2) f32 -- column 0 = cos(angle), column 1 = sin(angle).
    # xr_ref/xi_ref: (Ft, Bt) f32 tiles of the real / imag planes.
    c = cs_ref[:, 0:1]
    s = cs_ref[:, 1:2]
    xr = xr_ref[...]
    xi = xi_ref[...]
    or_ref[...] = c * xr - s * xi
    oi_ref[...] = s * xr + c * xi


def _round_up(x, m):
    return ((x + m - 1) // m) * m


def _vmem_capacity_bytes():
    try:
        return int(pltpu.get_tpu_info().vmem_capacity_bytes)
    except Exception:
        return 64 << 20  # conservative fallback (v7x per-TC VMEM)


def _pick_tiles(F, B, tile_budget_bytes):
    """Pick (f_tile, b_tile). Block dims are always legal: a multiple of
    (8, 128) or equal to the full array dim. Edge blocks are masked (cdiv
    grid), so no divisibility of F/B is required."""
    # Sublane (feature) tile: full extent when small, else a fixed 256 rows.
    f_tile = F if F <= 256 else 256

    # Lane (batch) tile: a multiple of 128, as wide as the VMEM budget allows.
    # 4 f32 tiles (xr, xi, out_r, out_i) x 2 pipeline buffers live at once.
    bytes_per_lane = 4 * 2 * f_tile * 4
    b_budget = max(128, (tile_budget_bytes // bytes_per_lane) // 128 * 128)
    b_tile = min(_round_up(B, 128), 2048, b_budget)

    # v7x has 2 TensorCores: make sure the parallel grid has >= 2 programs
    # when the problem allows it, so both cores get a share of the stream.
    if pl.cdiv(F, f_tile) * pl.cdiv(B, b_tile) == 1:
        if b_tile >= 256:
            b_tile //= 2                       # still a multiple of 128
        elif f_tile >= 16 and (f_tile // 2) % 8 == 0:
            f_tile //= 2                       # still a multiple of 8
    return f_tile, b_tile


def diag1_forward_planes(angle, x_real, x_imag):
    """Split-plane entry point (the HBM-optimal path).

    angle: (F, 1) or (F,) real; x_real/x_imag: (F, B) real.
    Returns (out_real, out_imag), each (F, B) f32.
    """
    F, B = x_real.shape
    angle = jnp.asarray(angle, jnp.float32).reshape(F, 1)
    x_real = x_real.astype(jnp.float32)
    x_imag = x_imag.astype(jnp.float32)

    # Hoist the transcendentals out of the kernel (only F elements each) and
    # pack them into one (F, 2) array -> a single tiny DMA per feature tile.
    cs = jnp.concatenate([jnp.cos(angle), jnp.sin(angle)], axis=1)

    cap = _vmem_capacity_bytes()
    f_tile, b_tile = _pick_tiles(F, B, tile_budget_bytes=cap // 5)
    grid = (pl.cdiv(F, f_tile), pl.cdiv(B, b_tile))

    cs_spec = pl.BlockSpec((f_tile, 2), lambda i, j: (i, 0))
    x_spec = pl.BlockSpec((f_tile, b_tile), lambda i, j: (i, j))

    out_r, out_i = pl.pallas_call(
        _diag1_kernel,
        out_shape=(
            jax.ShapeDtypeStruct((F, B), jnp.float32),
            jax.ShapeDtypeStruct((F, B), jnp.float32),
        ),
        grid_spec=pltpu.PrefetchScalarGridSpec(
            num_scalar_prefetch=0,
            grid=grid,
            in_specs=[cs_spec, x_spec, x_spec],
            out_specs=[x_spec, x_spec],
        ),
        compiler_params=pltpu.CompilerParams(
            dimension_semantics=("parallel", "parallel"),
            vmem_limit_bytes=cap // 2,
        ),
    )(cs, x_real, x_imag)
    return out_r, out_i


def diag1_forward(angle, x):
    """Complex-in / complex-out wrapper matching the PyTorch module.

    angle: (F, 1) f32; x: (F, B) complex64.  Returns (F, B) complex64.
    """
    # TODO(synk): lax.bitcast_convert_type rejects complex dtypes and Mosaic
    # has no complex VMEM element type, so the complex<->plane conversion
    # cannot be folded into the kernel; callers that already hold split
    # real/imag planes should use diag1_forward_planes directly to avoid the
    # extra split/recombine HBM passes.
    out_r, out_i = diag1_forward_planes(angle, jnp.real(x), jnp.imag(x))
    return jax.lax.complex(out_r, out_i)


def diag1_reference(angle, x):
    cosP = jnp.cos(angle)
    sinP = jnp.sin(angle)
    outR = cosP * jnp.real(x) - sinP * jnp.imag(x)
    outI = sinP * jnp.real(x) + cosP * jnp.imag(x)
    return jax.lax.complex(outR, outI)


if __name__ == "__main__":
    num_features = 128
    batch_size = 256

    key = jax.random.PRNGKey(0)
    k_ang, k_r, k_i = jax.random.split(key, 3)

    # nn.Parameter(torch.zeros(...)) -> zeros; use a small nonzero init so the
    # rotation is actually exercised (deterministic, in-script).
    angle = 0.1 * jax.random.normal(k_ang, (num_features, 1), dtype=jnp.float32)
    x_real = jax.random.normal(k_r, (num_features, batch_size), dtype=jnp.float32)
    x_imag = jax.random.normal(k_i, (num_features, batch_size), dtype=jnp.float32)
    x = jax.lax.complex(x_real, x_imag)

    out = jax.block_until_ready(diag1_forward(angle, x))
    ref = diag1_reference(angle, x)
    assert out.shape == (num_features, batch_size)
    assert out.dtype == jnp.complex64
    assert jnp.allclose(out, ref, atol=1e-5, rtol=1e-5)

    # Ragged shape: exercises the cdiv grid + masked edge block (no pad/slice).
    F2, B2 = 96, 200
    k_a2, k_r2, k_i2 = jax.random.split(jax.random.PRNGKey(1), 3)
    angle2 = 0.1 * jax.random.normal(k_a2, (F2, 1), dtype=jnp.float32)
    x2 = jax.lax.complex(
        jax.random.normal(k_r2, (F2, B2), dtype=jnp.float32),
        jax.random.normal(k_i2, (F2, B2), dtype=jnp.float32),
    )
    out2 = jax.block_until_ready(diag1_forward(angle2, x2))
    assert jnp.allclose(out2, diag1_reference(angle2, x2), atol=1e-5, rtol=1e-5)

    print("KERNEL_OK")
</pallas_src>

<mosaic_0001>
module attributes {stable_mosaic.version = 11 : i64} {
  func.func @_diag1_kernel(%arg0: i32, %arg1: i32, %arg2: memref<128x2xf32, #tpu.memory_space<vmem>>, %arg3: memref<128x128xf32, #tpu.memory_space<vmem>>, %arg4: memref<128x128xf32, #tpu.memory_space<vmem>>, %arg5: memref<128x128xf32, #tpu.memory_space<vmem>>, %arg6: memref<128x128xf32, #tpu.memory_space<vmem>>) attributes {dimension_semantics = [#tpu.dimension_semantics<parallel>, #tpu.dimension_semantics<parallel>], iteration_bounds = array<i64: 1, 2>, scalar_prefetch = 0 : i64, scratch_operands = 0 : i64, tpu.core_type = #tpu.core_type<tc>, window_params = [{transform_indices = @transform_0, window_bounds = array<i64: 128, 2>}, {transform_indices = @transform_1, window_bounds = array<i64: 128, 128>}, {transform_indices = @transform_2, window_bounds = array<i64: 128, 128>}, {transform_indices = @transform_3, window_bounds = array<i64: 128, 128>}, {transform_indices = @transform_4, window_bounds = array<i64: 128, 128>}]} {
    %c0 = arith.constant 0 : index
    %c0_0 = arith.constant 0 : index
    %0 = vector.load %arg2[%c0, %c0_0] : memref<128x2xf32, #tpu.memory_space<vmem>>, vector<128x1xf32>
    %c0_1 = arith.constant 0 : index
    %c1 = arith.constant 1 : index
    %1 = vector.load %arg2[%c0_1, %c1] : memref<128x2xf32, #tpu.memory_space<vmem>>, vector<128x1xf32>
    %c0_2 = arith.constant 0 : index
    %c0_3 = arith.constant 0 : index
    %2 = vector.load %arg3[%c0_2, %c0_3] : memref<128x128xf32, #tpu.memory_space<vmem>>, vector<128x128xf32>
    %c0_4 = arith.constant 0 : index
    %c0_5 = arith.constant 0 : index
    %3 = vector.load %arg4[%c0_4, %c0_5] : memref<128x128xf32, #tpu.memory_space<vmem>>, vector<128x128xf32>
    %4 = vector.broadcast %0 : vector<128x1xf32> to vector<128x128xf32>
    %5 = arith.mulf %4, %2 : vector<128x128xf32>
    %6 = vector.broadcast %1 : vector<128x1xf32> to vector<128x128xf32>
    %7 = arith.mulf %6, %3 : vector<128x128xf32>
    %8 = arith.subf %5, %7 : vector<128x128xf32>
    %c0_6 = arith.constant 0 : index
    %c0_7 = arith.constant 0 : index
    %9 = vector.load %arg5[%c0_6, %c0_7] : memref<128x128xf32, #tpu.memory_space<vmem>>, vector<128x128xf32>
    tpu.vector_store %arg5[%c0_6, %c0_7], %8 {strides = array<i32>} : memref<128x128xf32, #tpu.memory_space<vmem>>, vector<128x128xf32>,
    %10 = vector.broadcast %1 : vector<128x1xf32> to vector<128x128xf32>
    %11 = arith.mulf %10, %2 : vector<128x128xf32>
    %12 = vector.broadcast %0 : vector<128x1xf32> to vector<128x128xf32>
    %13 = arith.mulf %12, %3 : vector<128x128xf32>
    %14 = arith.addf %11, %13 : vector<128x128xf32>
    %c0_8 = arith.constant 0 : index
    %c0_9 = arith.constant 0 : index
    %15 = vector.load %arg6[%c0_8, %c0_9] : memref<128x128xf32, #tpu.memory_space<vmem>>, vector<128x128xf32>
    tpu.vector_store %arg6[%c0_8, %c0_9], %14 {strides = array<i32>} : memref<128x128xf32, #tpu.memory_space<vmem>>, vector<128x128xf32>,
    return
  }
  func.func @transform_0(%arg0: i32, %arg1: i32) -> (i32, i32) {
    %c0_i32 = arith.constant 0 : i32
    %c0_i32_0 = arith.constant 0 : i32
    return %arg0, %c0_i32 : i32, i32
  }
  func.func @transform_1(%arg0: i32, %arg1: i32) -> (i32, i32) {
    %c0_i32 = arith.constant 0 : i32
    return %arg0, %arg1 : i32, i32
  }
  func.func @transform_2(%arg0: i32, %arg1: i32) -> (i32, i32) {
    %c0_i32 = arith.constant 0 : i32
    return %arg0, %arg1 : i32, i32
  }
  func.func @transform_3(%arg0: i32, %arg1: i32) -> (i32, i32) {
    %c0_i32 = arith.constant 0 : i32
    return %arg0, %arg1 : i32, i32
  }
  func.func @transform_4(%arg0: i32, %arg1: i32) -> (i32, i32) {
    %c0_i32 = arith.constant 0 : i32
    return %arg0, %arg1 : i32, i32
  }
}

</mosaic_0001>

<bundles_post_ra>
// kernel: tpu_custom_call.1
= control target key start
LH: loop header
LB: loop body
LE: loop exit
PB: predicated region body
PF: predicated region fallthrough
CT: control target
= control target key end

     0   :  { %s1531_s0 = inlined_call_operand.vmem [shape: f32[128,2], index: 0, kind: input, shape index: {}]   ;;  %s1532_s1 = inlined_call_operand.hbm [shape: f32[128,256], index: 1, kind: input, shape index: {}]   ;;  %s1533_s2 = inlined_call_operand.hbm [shape: f32[128,256], index: 2, kind: input, shape index: {}]   ;;  %s1534_s3 = inlined_call_operand.hbm [shape: f32[128,256], index: 3, kind: output, shape index: {0}]   ;;  %s1535_s4 = inlined_call_operand.hbm [shape: f32[128,256], index: 4, kind: output, shape index: {1}]  }
   0x1   :  { %1537 = sst [smem:[#allocation16_spill]] %s1532_s1 }
   0x2   :  { %10 = vsyncpa [#allocation3], 0 }
   0x3   :  { %12 = vsyncpa [#allocation3 + $0x1], 0 }
   0x4   :  { %13 = vsyncpa [#allocation6], 0 }
   0x5   :  { %15 = vsyncpa [#allocation6 + $0x1], 0 }
   0x6   :  { %16 = vsyncpa [#allocation4], 0 }
   0x7   :  { %18 = vsyncpa [#allocation4 + $0x1], 0 }
   0x8   :  { %19 = vsyncpa [#allocation9], 0 }
   0x9   :  { %21 = vsyncpa [#allocation9 + $0x1], 0  ;;  %s1148_s15 = smov 0   ;;  %s1150_s16 = smov 0  }
   0xa   :  { %s1152_s17 = smov 0   ;;  %s1154_s18 = smov 0  }
   0xb   :  { %s1156_s19 = smov 0   ;;  %s1158_s20 = smov 0  }
   0xc LB: > { %s835_s21 = sadd.s32 4294967295, %s1109_s20   ;;  %s836_s22 = sadd.s32 4294967294, %s1109_s20   ;;  %s1109_s20 = sphi %s1158_s20, %s27_s20   ;;  %s1105_s19 = sphi %s1156_s19, %s1553_s19   ;;  %s1101_s18 = sphi %s1154_s18, %s1552_s18   ;;  %s1097_s17 = sphi %s1152_s17, %s1551_s17   ;;  %s1093_s16 = sphi %s1150_s16, %s1550_s16   ;;  %s1089_s15 = sphi %s1148_s15, %s1549_s15  }
   0xd   : > { %s36_s23 = sadd.s32 1, %s1105_s19  ;;  %s74_s24 = sadd.s32 1, %s1097_s17 }
   0xe   : > { %p37_p0 = scmp.ge.s32.totalorder %s36_s23, 2  ;;  %p81_p1 = scmp.ne.s32.totalorder %s1097_s17, %s1093_s16 }
   0xf   : > { %p82_p2 = scmp.eq.s32.totalorder %s1109_s20, 0  ;;  %p87_p3 = scmp.ne.s32.totalorder %s1093_s16, %s1089_s15 }
  0x10   : > { %s1555_s23 = smov (%p37_p0, %s36_s23), 0  ;;  %p88_p5 = scmp.eq.s32.totalorder %s835_s21, 0 }
  0x11   : > { %1538 = sst [smem:[#allocation14_spill]] %s1555_s23  ;;  %p1189_p4 = por %p82_p2, %p81_p1 }
  0x12   : > { %s70_s26 = ssub.s32 %s1105_s19, %s1555_s23  ;;  %p141_p6 = scmp.eq.s32.totalorder %s835_s21, 1 }
  0x13   : > { %p72_p7 = scmp.eq.s32.totalorder %s70_s26, 0  ;;  %p1195_p8 = por %p88_p5, %p87_p3 }
  0x14   : > { %p1199_p9 = por %p141_p6, %p81_p1  ;;  %p147_p10 = scmp.eq.s32.totalorder %s836_s22, 1 }
  0x15   : > { %s1204_s29 = scalar_select %p72_p7, %s1097_s17, %s74_s24  }
  0x16   : > { %p1206_p11 = por %p147_p10, %p87_p3  ;;  %p839_p12 = scmp.ge.s32.totalorder %s1109_s20, 2 }
  0x17   : > { %1542 = sst [smem:[#allocation15_spill]] %s1204_s29  ;;  %p877_p13 = scmp.lt.s32.totalorder %s1109_s20, 2 }
  0x18   : > { %s1213_s5 = sand.u32 1, %s1097_s17   ;;  %s841_s7 = sshll.u32 %s1105_s19, 7 }
  0x19   : > { %s840_s6 = sshll.u32 %s1213_s5, 7  ;;  %s1544_s1 = sld [smem:[#allocation16_spill]] }
  0x1a   : > { %s208_s11 = scalar_lea.vmem [#allocation2], %s840_s6  ;;  %p1226_p0 = pnand %p877_p13, %p1189_p4 }
  0x1b   : > { %s217_s12 = sshll.u32 %s208_s11, 4  ;;  %s205_s14 = scalar_lea.sflag [#allocation3], %s1213_s5  ;;  %s218_s12 = int_to_ptr.vmem [resolvable:$true] %s217_s12 }
  0x1c   : > { %p941_p1 = pneg %p1226_p0  ;;  %s952_s21 = scalar_lea.vmem %s218_s12, 2048 }
  0x1d   : > { %p953_p2 = scmp.ne.s32.totalorder %s218_s12, %s952_s21  ;;  %s1111_s22 = smov [#allocation2]  }
  0x1e   : > { %s957_s24 = sshll.u32 %s1111_s22, 4  ;;  %s958_s24 = int_to_ptr.vmem [resolvable:$false] %s957_s24 }
  0x1f   : > { %s216_s10 = scalar_lea.hbm %s1544_s1, %s841_s7  ;;  %p955_p3 = pnand %p953_p2, %p941_p1 }
  0x20   : > { %s959_s26 = scalar_lea.vmem %s958_s24, 4096  ;;  %p960_p6 = scmp.lt.s32.totalorder %s218_s12, %s958_s24 }
  0x21   : > { %p956_p5 = pneg %p955_p3  ;;  %p961_p4 = scmp.lt.s32.totalorder %s959_s26, %s952_s21 }
  0x23   : > { %p962_p7 = por %p961_p4, %p960_p6 }
  0x25   : > { %p963_p10 = pnand %p962_p7, %p956_p5 }
  0x27   : > { %966 = shalt.err (!%p963_p10)
}
  0x28   : > { %s1112_s25 = smov 256   ;;  %s1113_s8 = smov 128  }
  0x29   : > { %s1114_s9 = smov 8   ;;  %p844_p13 = scmp.ge.s32.totalorder %s1109_s20, 1 }
  0x2a   : > { %866 = dma.hbm_to_vmem [thread:$0]  (!%p1226_p0), %s216_s10, 2048, %s218_s12, %s205_s14, %s1112_s25, %s1113_s8, %s1114_s9  }
  0x2b   : > { %p248_p2 = scmp.lt.s32.totalorder %s1109_s20, 3  ;;  %s239_s24 = scalar_lea.hbm %s1533_s2, %s841_s7 }
  0x2c   : > { %s231_s26 = scalar_lea.vmem [#allocation5], %s840_s6  ;;  %s228_s23 = scalar_lea.sflag [#allocation6], %s1213_s5 }
  0x2d   : > { %p1241_p3 = pnand %p844_p13, %p248_p2  ;;  %s240_s1 = sshll.u32 %s231_s26, 4  ;;  %s241_s1 = int_to_ptr.vmem [resolvable:$true] %s240_s1 }
  0x2e   : > { %s980_s29 = scalar_lea.vmem %s241_s1, 2048  ;;  %s1115_s10 = smov [#allocation5]  }
  0x2f   : > { %p981_p5 = scmp.ne.s32.totalorder %s241_s1, %s980_s29  ;;  %s985_s12 = sshll.u32 %s1115_s10, 4  ;;  %s986_s12 = int_to_ptr.vmem [resolvable:$false] %s985_s12 }
  0x30   : > { %s987_s14 = scalar_lea.vmem %s986_s12, 4096  ;;  %p988_p7 = scmp.lt.s32.totalorder %s241_s1, %s986_s12 }
  0x31   : > { %p983_p6 = pnand %p981_p5, %p941_p1  ;;  %p989_p10 = scmp.lt.s32.totalorder %s987_s14, %s980_s29 }
  0x33   : > { %p984_p4 = pneg %p983_p6  ;;  %p990_p13 = por %p989_p10, %p988_p7 }
  0x35   : > { %p991_p2 = pnand %p990_p13, %p984_p4 }
  0x37   : > { %994 = shalt.err (!%p991_p2)
}
  0x38   : > { %869 = dma.hbm_to_vmem [thread:$0]  (!%p1226_p0), %s239_s24, 2048, %s241_s1, %s228_s23, %s1112_s25, %s1113_s8, %s1114_s9  }
  0x39   : > { %252 = sbr.rel (%p1241_p3) target bundleno = 293 (0x125), region = 32  ;;  %s1262_s5 = sand.u32 (!%p1241_p3), 1, %s1093_s16  }
  0x3a   : > { %s1265_s6 = sshll.u32 (!%p1241_p3), %s1262_s5, 7  ;;  %s255_s29 = scalar_lea.sflag (!%p1241_p3), [#allocation3], %s1262_s5 }
  0x3b   : > { %s1269_s7 = scalar_lea.vmem (!%p1241_p3), [#allocation2], %s1265_s6 }
  0x3e   : > { %1072 = dma.done.wait (%p1195_p8), %s255_s29, 2048  }
  0x3f   : > { %1074 = vsyncadd (%p1195_p8), %s255_s29, 4294965248  ;;  %s264_s1 = scalar_lea.sflag [#allocation6], %s1262_s5  ;;  %s1277_s23 = scalar_lea.vmem [#allocation5], %s1265_s6 }
  0x40   : > { %1076 = dma.done.wait (%p1195_p8), %s264_s1, 2048  }
  0x41   : > { %1078 = vsyncadd (%p1195_p8), %s264_s1, 4294965248  ;;  %v1116_v0 = vmov 0   ;;  %v319_v1 = vld [vmem:[%s1531_s0 + $0x10] sm:$0xff]  ;;  %v317_v2 = vld [vmem:[%s1531_s0] sm:$0xff]  ;;  %v1117_v17 = vmov 1   ;;  %s1364_s8 = scalar_lea.vmem [#allocation7], %s1265_s6 }
  0x42   : > { %936 = vset.pattern.permute.xlu1 %v1116_v0  ;;  %935 = vset.pattern.permute.xlu0 %v1116_v0  ;;  %v320_v3 = vld [vmem:[%s1531_s0 + $0x18] sm:$0xff]  ;;  %v318_v4 = vld [vmem:[%s1531_s0 + $0x8] sm:$0xff]  ;;  %v321_v6 = vld [vmem:[%s1531_s0 + $0x20] sm:$0xff]  ;;  %s1368_s9 = scalar_lea.vmem [#allocation8], %s1265_s6  ;;  %s851_s6 = sshll.u32 %s1101_s18, 7 }
  0x43   : > { %377 = vperm.xlu1 %936, %v319_v1   ;;  %367 = vperm.xlu0 %935, %v317_v2   ;;  %v322_v5 = vld [vmem:[%s1531_s0 + $0x28] sm:$0xff]  ;;  %v324_v7 = vld [vmem:[%s1531_s0 + $0x38] sm:$0xff]  ;;  %v323_v8 = vld [vmem:[%s1531_s0 + $0x30] sm:$0xff]  ;;  %s658_s11 = sshll.u32 %s1364_s8, 4  ;;  %s1438_s18 = scalar_lea.hbm %s1534_s3, %s851_s6  ;;  %s1444_s11 = int_to_ptr.vmem [resolvable:$true] %s658_s11 }
  0x44   : > { %v326_v9 = vld [vmem:[%s1531_s0 + $0x48] sm:$0xff]  ;;  %v325_v10 = vld [vmem:[%s1531_s0 + $0x40] sm:$0xff]  ;;  %v328_v11 = vld [vmem:[%s1531_s0 + $0x58] sm:$0xff]  ;;  %s676_s21 = sshll.u32 %s1368_s9, 4  ;;  %s1450_s24 = scalar_lea.hbm %s1535_s4, %s851_s6  ;;  %s1452_s21 = int_to_ptr.vmem [resolvable:$true] %s676_s21 }
  0x45   : > { %v327_v12 = vld [vmem:[%s1531_s0 + $0x50] sm:$0xff]  ;;  %v330_v13 = vld [vmem:[%s1531_s0 + $0x68] sm:$0xff]  ;;  %v329_v14 = vld [vmem:[%s1531_s0 + $0x60] sm:$0xff]  ;;  %s638_s26 = scalar_lea.sflag [#allocation4], %s1262_s5  ;;  %s995_s10 = scalar_lea.vmem %s1444_s11, 2048 }
  0x46   : > { %v332_v15 = vld [vmem:[%s1531_s0 + $0x78] sm:$0xff]  ;;  %v331_v16 = vld [vmem:[%s1531_s0 + $0x70] sm:$0xff]  ;;  %v333_v34 = vld [vmem:[%s1269_s7] sm:$0xff]  ;;  %p996_p8 = scmp.ne.s32.totalorder %s1444_s11, %s995_s10  ;;  %s1118_s12 = smov [#allocation7]  }
  0x47   : > { %382 = vperm.xlu1 %936, %v320_v3   ;;  %372 = vperm.xlu0 %935, %v318_v4   ;;  %v349_v35 = vld [vmem:[%s1277_s23] sm:$0xff]  ;;  %v334_v36 = vld [vmem:[%s1269_s7 + $0x8] sm:$0xff]  ;;  %v335_v38 = vld [vmem:[%s1269_s7 + $0x10] sm:$0xff]  ;;  %s999_s14 = sshll.u32 %s1118_s12, 4  ;;  %s1000_s14 = int_to_ptr.vmem [resolvable:$false] %s999_s14 }
  0x48   : > { %v350_v37 = vld [vmem:[%s1277_s23 + $0x8] sm:$0xff]  ;;  %v351_v45 = vld [vmem:[%s1277_s23 + $0x10] sm:$0xff]  ;;  %v336_v46 = vld [vmem:[%s1269_s7 + $0x18] sm:$0xff]  ;;  %p997_p0 = pnand %p996_p8, %p1199_p9  ;;  %s1001_s29 = scalar_lea.vmem %s1000_s14, 4096 }
  0x49   : > { %v352_v47 = vld [vmem:[%s1277_s23 + $0x18] sm:$0xff]  ;;  %v338_v60 = vld [vmem:[%s1269_s7 + $0x28] sm:$0xff]  ;;  %v337_v0 = vld [vmem:[%s1269_s7 + $0x20] sm:$0xff]  ;;  %p1002_p3 = scmp.lt.s32.totalorder %s1444_s11, %s1000_s14  ;;  %p1003_p5 = scmp.lt.s32.totalorder %s1001_s29, %s995_s10 }
  0x4a   : > { %v354_v63 = vld [vmem:[%s1277_s23 + $0x28] sm:$0xff]  ;;  %p998_p1 = pneg %p997_p0 }
  0x4b   : > { %392 = vperm.xlu1 %936, %v322_v5   ;;  %387 = vperm.xlu0 %935, %v321_v6   ;;  %p1004_p6 = por %p1003_p5, %p1002_p3 }
  0x4d   : > { %p1005_p4 = pnand %p1004_p6, %p998_p1 }
  0x4f   : > { %402 = vperm.xlu1 %936, %v324_v7   ;;  %397 = vperm.xlu0 %935, %v323_v8  }
  0x53   : > { %412 = vperm.xlu1 %936, %v326_v9   ;;  %407 = vperm.xlu0 %935, %v325_v10  }
  0x57   : > { %422 = vperm.xlu1 %936, %v328_v11   ;;  %417 = vperm.xlu0 %935, %v327_v12  }
  0x5b   : > { %432 = vperm.xlu1 %936, %v330_v13   ;;  %427 = vperm.xlu0 %935, %v329_v14  }
  0x5f   : > { %442 = vperm.xlu1 %936, %v332_v15   ;;  %437 = vperm.xlu0 %935, %v331_v16  }
  0x63   : > { %938 = vset.pattern.permute.xlu1 %v1117_v17  ;;  %937 = vset.pattern.permute.xlu0 %v1117_v17  ;;  %v356_v17 = vld [vmem:[%s1277_s23 + $0x38] sm:$0xff] }
  0x64   : > { %466 = vperm.xlu1 %938, %v318_v4   ;;  %462 = vperm.xlu0 %937, %v317_v2  }
  0x68   : > { %470 = vperm.xlu1 %938, %v319_v1   ;;  %474 = vperm.xlu0 %937, %v320_v3   ;;  %v353_v1 = vld [vmem:[%s1277_s23 + $0x20] sm:$0xff] }
  0x6c   : > { %478 = vperm.xlu1 %938, %v321_v6   ;;  %482 = vperm.xlu0 %937, %v322_v5  }
  0x70   : > { %486 = vperm.xlu1 %938, %v323_v8   ;;  %490 = vperm.xlu0 %937, %v324_v7  }
  0x74   : > { %494 = vperm.xlu1 %938, %v325_v10   ;;  %498 = vperm.xlu0 %937, %v326_v9  }
  0x78   : > { %502 = vperm.xlu1 %938, %v327_v12   ;;  %506 = vperm.xlu0 %937, %v328_v11  }
  0x7c   : > { %510 = vperm.xlu1 %938, %v329_v14   ;;  %514 = vperm.xlu0 %937, %v330_v13   ;;  %v340_v14 = vld [vmem:[%s1269_s7 + $0x38] sm:$0xff] }
  0x80   : > { %518 = vperm.xlu1 %938, %v331_v16   ;;  %522 = vperm.xlu0 %937, %v332_v15  }
  0xbe   : > { %v378_v18 = vpop.permute.xlu1 %377  ;;  %v368_v19 = vpop.permute.xlu0 %367 }
  0xbf   : > { %v445_v39 = vmul.f32 %v368_v19, %v333_v34  ;;  %v589_v40 = vmul.f32 %v368_v19, %v349_v35  ;;  %v447_v56 = vmul.f32 %v378_v18, %v335_v38  ;;  %v591_v57 = vmul.f32 %v378_v18, %v351_v45  ;;  %v339_v18 = vld [vmem:[%s1269_s7 + $0x30] sm:$0xff] }
  0xc0   : > { %v355_v19 = vld [vmem:[%s1277_s23 + $0x30] sm:$0xff] }
  0xc2   : > { %v383_v20 = vpop.permute.xlu1 %382  ;;  %v373_v21 = vpop.permute.xlu0 %372 }
  0xc3   : > { %v446_v41 = vmul.f32 %v373_v21, %v334_v36  ;;  %v590_v42 = vmul.f32 %v373_v21, %v350_v37  ;;  %v448_v58 = vmul.f32 %v383_v20, %v336_v46  ;;  %v592_v59 = vmul.f32 %v383_v20, %v352_v47 }
  0xc6   : > { %v393_v22 = vpop.permute.xlu1 %392  ;;  %v388_v23 = vpop.permute.xlu0 %387 }
  0xc7   : > { %v450_v10 = vmul.f32 %v393_v22, %v338_v60  ;;  %v594_v11 = vmul.f32 %v393_v22, %v354_v63  ;;  %v449_v12 = vmul.f32 %v388_v23, %v337_v0  ;;  %v593_v13 = vmul.f32 %v388_v23, %v353_v1 }
  0xca   : > { %v1331_v24 = vpop.permute.xlu1 %402  ;;  %v1333_v25 = vpop.permute.xlu0 %397 }
  0xce   : > { %v1335_v26 = vpop.permute.xlu1 %412  ;;  %v1337_v27 = vpop.permute.xlu0 %407 }
  0xd2   : > { %v1339_v28 = vpop.permute.xlu1 %422  ;;  %v1341_v29 = vpop.permute.xlu0 %417 }
  0xd6   : > { %v1343_v30 = vpop.permute.xlu1 %432  ;;  %v1345_v31 = vpop.permute.xlu0 %427 }
  0xda   : > { %v1347_v32 = vpop.permute.xlu1 %442  ;;  %v1349_v33 = vpop.permute.xlu0 %437 }
  0xdf   : > { %v467_v43 = vpop.permute.xlu1 %466  ;;  %v463_v44 = vpop.permute.xlu0 %462 }
  0xe0   : > { %v526_v48 = vmul.f32 %v467_v43, %v350_v37  ;;  %v574_v49 = vmul.f32 %v467_v43, %v334_v36  ;;  %v525_v50 = vmul.f32 %v463_v44, %v349_v35  ;;  %v573_v51 = vmul.f32 %v463_v44, %v333_v34 }
  0xe2   : > { %v542_v52 = vsub.f32 %v446_v41, %v526_v48  ;;  %v606_v53 = vadd.f32 %v590_v42, %v574_v49  ;;  %v541_v54 = vsub.f32 %v445_v39, %v525_v50  ;;  %v605_v55 = vadd.f32 %v589_v40, %v573_v51  ;;  %v342_v42 = vld [vmem:[%s1269_s7 + $0x48] sm:$0xff] }
  0xe3   : > { %v471_v61 = vpop.permute.xlu1 %470  ;;  %v475_v62 = vpop.permute.xlu0 %474  ;;  %v596_v39 = vmul.f32 %v1331_v24, %v356_v17  ;;  %v451_v40 = vmul.f32 %v1333_v25, %v339_v18  ;;  %v595_v41 = vmul.f32 %v1333_v25, %v355_v19 }
  0xe4   : > { %558 = vst [vmem:[%s1364_s8 + $0x8] sm:$0xff] %v542_v52  ;;  %622 = vst [vmem:[%s1368_s9 + $0x8] sm:$0xff] %v606_v53  ;;  %v527_v2 = vmul.f32 %v471_v61, %v351_v45  ;;  %v575_v3 = vmul.f32 %v471_v61, %v335_v38  ;;  %v528_v4 = vmul.f32 %v475_v62, %v352_v47  ;;  %v358_v45 = vld [vmem:[%s1277_s23 + $0x48] sm:$0xff]  ;;  %v357_v47 = vld [vmem:[%s1277_s23 + $0x40] sm:$0xff] }
  0xe5   : > { %557 = vst [vmem:[%s1364_s8] sm:$0xff] %v541_v54  ;;  %621 = vst [vmem:[%s1368_s9] sm:$0xff] %v605_v55  ;;  %v576_v5 = vmul.f32 %v475_v62, %v336_v46  ;;  %v452_v38 = vmul.f32 %v1331_v24, %v340_v14  ;;  %v341_v46 = vld [vmem:[%s1269_s7 + $0x40] sm:$0xff]  ;;  %v454_v54 = vmul.f32 %v1335_v26, %v342_v42  ;;  %v360_v61 = vld [vmem:[%s1277_s23 + $0x58] sm:$0xff] }
  0xe6   : > { %v543_v6 = vsub.f32 %v447_v56, %v527_v2  ;;  %v607_v7 = vadd.f32 %v591_v57, %v575_v3  ;;  %v544_v8 = vsub.f32 %v448_v58, %v528_v4  ;;  %v598_v55 = vmul.f32 %v1335_v26, %v358_v45  ;;  %v344_v58 = vld [vmem:[%s1269_s7 + $0x58] sm:$0xff]  ;;  %v343_v62 = vld [vmem:[%s1269_s7 + $0x50] sm:$0xff] }
  0xe7   : > { %v608_v9 = vadd.f32 %v592_v59, %v576_v5  ;;  %v479_v15 = vpop.permute.xlu1 %478  ;;  %v483_v16 = vpop.permute.xlu0 %482  ;;  %v453_v56 = vmul.f32 %v1337_v27, %v341_v46  ;;  %v597_v57 = vmul.f32 %v1337_v27, %v357_v47 }
  0xe8   : > { %559 = vst [vmem:[%s1364_s8 + $0x10] sm:$0xff] %v543_v6  ;;  %623 = vst [vmem:[%s1368_s9 + $0x10] sm:$0xff] %v607_v7  ;;  %v529_v20 = vmul.f32 %v479_v15, %v353_v1  ;;  %v577_v21 = vmul.f32 %v479_v15, %v337_v0  ;;  %v530_v34 = vmul.f32 %v483_v16, %v354_v63  ;;  %v359_v63 = vld [vmem:[%s1277_s23 + $0x50] sm:$0xff]  ;;  %v361_v15 = vld [vmem:[%s1277_s23 + $0x60] sm:$0xff] }
  0xe9   : > { %560 = vst [vmem:[%s1364_s8 + $0x18] sm:$0xff] %v544_v8  ;;  %624 = vst [vmem:[%s1368_s9 + $0x18] sm:$0xff] %v608_v9  ;;  %v578_v22 = vmul.f32 %v483_v16, %v338_v60  ;;  %v456_v6 = vmul.f32 %v1339_v28, %v344_v58  ;;  %v600_v7 = vmul.f32 %v1339_v28, %v360_v61 }
  0xea   : > { %v545_v23 = vsub.f32 %v449_v12, %v529_v20  ;;  %v609_v35 = vadd.f32 %v593_v13, %v577_v21  ;;  %v546_v36 = vsub.f32 %v450_v10, %v530_v34  ;;  %v455_v8 = vmul.f32 %v1341_v29, %v343_v62  ;;  %v346_v10 = vld [vmem:[%s1269_s7 + $0x68] sm:$0xff] }
  0xeb   : > { %v610_v37 = vadd.f32 %v594_v11, %v578_v22  ;;  %v487_v43 = vpop.permute.xlu1 %486  ;;  %v491_v44 = vpop.permute.xlu0 %490  ;;  %v599_v9 = vmul.f32 %v1341_v29, %v359_v63  ;;  %v362_v13 = vld [vmem:[%s1277_s23 + $0x68] sm:$0xff]  ;;  %v458_v34 = vmul.f32 %v1343_v30, %v346_v10 }
  0xec   : > { %561 = vst [vmem:[%s1364_s8 + $0x20] sm:$0xff] %v545_v23  ;;  %625 = vst [vmem:[%s1368_s9 + $0x20] sm:$0xff] %v609_v35  ;;  %v531_v48 = vmul.f32 %v487_v43, %v355_v19  ;;  %v579_v49 = vmul.f32 %v487_v43, %v339_v18  ;;  %v532_v24 = vmul.f32 %v491_v44, %v356_v17  ;;  %v363_v43 = vld [vmem:[%s1277_s23 + $0x70] sm:$0xff] }
  0xed   : > { %562 = vst [vmem:[%s1364_s8 + $0x28] sm:$0xff] %v546_v36  ;;  %626 = vst [vmem:[%s1368_s9 + $0x28] sm:$0xff] %v610_v37  ;;  %v580_v50 = vmul.f32 %v491_v44, %v340_v14  ;;  %v345_v14 = vld [vmem:[%s1269_s7 + $0x60] sm:$0xff]  ;;  %v602_v22 = vmul.f32 %v1343_v30, %v362_v13  ;;  %v601_v35 = vmul.f32 %v1345_v31, %v361_v15  ;;  %v348_v30 = vld [vmem:[%s1269_s7 + $0x78] sm:$0xff] }
  0xee   : > { %v547_v25 = vsub.f32 %v451_v40, %v531_v48  ;;  %v611_v51 = vadd.f32 %v595_v41, %v579_v49  ;;  %v548_v52 = vsub.f32 %v452_v38, %v532_v24  ;;  %v457_v23 = vmul.f32 %v1345_v31, %v345_v14  ;;  %v347_v38 = vld [vmem:[%s1269_s7 + $0x70] sm:$0xff]  ;;  %v364_v44 = vld [vmem:[%s1277_s23 + $0x78] sm:$0xff] }
  0xef   : > { %v612_v53 = vadd.f32 %v596_v39, %v580_v50  ;;  %v495_v59 = vpop.permute.xlu1 %494  ;;  %v499_v60 = vpop.permute.xlu0 %498  ;;  %v459_v49 = vmul.f32 %v1349_v33, %v347_v38  ;;  %v603_v24 = vmul.f32 %v1349_v33, %v363_v43  ;;  %v460_v50 = vmul.f32 %v1347_v32, %v348_v30 }
  0xf0   : > { %563 = vst [vmem:[%s1364_s8 + $0x30] sm:$0xff] %v547_v25  ;;  %627 = vst [vmem:[%s1368_s9 + $0x30] sm:$0xff] %v611_v51  ;;  %v533_v0 = vmul.f32 %v495_v59, %v357_v47  ;;  %v581_v1 = vmul.f32 %v495_v59, %v341_v46  ;;  %v534_v26 = vmul.f32 %v499_v60, %v358_v45 }
  0xf1   : > { %564 = vst [vmem:[%s1364_s8 + $0x38] sm:$0xff] %v548_v52  ;;  %628 = vst [vmem:[%s1368_s9 + $0x38] sm:$0xff] %v612_v53  ;;  %v582_v2 = vmul.f32 %v499_v60, %v342_v42  ;;  %v604_v25 = vmul.f32 %v1347_v32, %v364_v44 }
  0xf2   : > { %v549_v27 = vsub.f32 %v453_v56, %v533_v0  ;;  %v613_v3 = vadd.f32 %v597_v57, %v581_v1  ;;  %v550_v4 = vsub.f32 %v454_v54, %v534_v26 }
  0xf3   : > { %v614_v5 = vadd.f32 %v598_v55, %v582_v2  ;;  %v503_v11 = vpop.permute.xlu1 %502  ;;  %v507_v12 = vpop.permute.xlu0 %506 }
  0xf4   : > { %565 = vst [vmem:[%s1364_s8 + $0x40] sm:$0xff] %v549_v27  ;;  %629 = vst [vmem:[%s1368_s9 + $0x40] sm:$0xff] %v613_v3  ;;  %v535_v16 = vmul.f32 %v503_v11, %v359_v63  ;;  %v583_v17 = vmul.f32 %v503_v11, %v343_v62  ;;  %v536_v28 = vmul.f32 %v507_v12, %v360_v61 }
  0xf5   : > { %566 = vst [vmem:[%s1364_s8 + $0x48] sm:$0xff] %v550_v4  ;;  %630 = vst [vmem:[%s1368_s9 + $0x48] sm:$0xff] %v614_v5  ;;  %v584_v18 = vmul.f32 %v507_v12, %v344_v58 }
  0xf6   : > { %v551_v29 = vsub.f32 %v455_v8, %v535_v16  ;;  %v615_v19 = vadd.f32 %v599_v9, %v583_v17  ;;  %v552_v20 = vsub.f32 %v456_v6, %v536_v28 }
  0xf7   : > { %v616_v21 = vadd.f32 %v600_v7, %v584_v18  ;;  %v511_v36 = vpop.permute.xlu1 %510  ;;  %v515_v37 = vpop.permute.xlu0 %514 }
  0xf8   : > { %567 = vst [vmem:[%s1364_s8 + $0x50] sm:$0xff] %v551_v29  ;;  %631 = vst [vmem:[%s1368_s9 + $0x50] sm:$0xff] %v615_v19  ;;  %v537_v39 = vmul.f32 %v511_v36, %v361_v15  ;;  %v585_v40 = vmul.f32 %v511_v36, %v345_v14  ;;  %v538_v41 = vmul.f32 %v515_v37, %v362_v13 }
  0xf9   : > { %568 = vst [vmem:[%s1364_s8 + $0x58] sm:$0xff] %v552_v20  ;;  %632 = vst [vmem:[%s1368_s9 + $0x58] sm:$0xff] %v616_v21  ;;  %v586_v42 = vmul.f32 %v515_v37, %v346_v10 }
  0xfa   : > { %v553_v31 = vsub.f32 %v457_v23, %v537_v39  ;;  %v617_v45 = vadd.f32 %v601_v35, %v585_v40  ;;  %v554_v46 = vsub.f32 %v458_v34, %v538_v41 }
  0xfb   : > { %v618_v47 = vadd.f32 %v602_v22, %v586_v42  ;;  %v519_v48 = vpop.permute.xlu1 %518  ;;  %v523_v51 = vpop.permute.xlu0 %522 }
  0xfc   : > { %569 = vst [vmem:[%s1364_s8 + $0x60] sm:$0xff] %v553_v31  ;;  %633 = vst [vmem:[%s1368_s9 + $0x60] sm:$0xff] %v617_v45  ;;  %v539_v52 = vmul.f32 %v519_v48, %v363_v43  ;;  %v587_v33 = vmul.f32 %v519_v48, %v347_v38  ;;  %v540_v53 = vmul.f32 %v523_v51, %v364_v44 }
  0xfd   : > { %570 = vst [vmem:[%s1364_s8 + $0x68] sm:$0xff] %v554_v46  ;;  %634 = vst [vmem:[%s1368_s9 + $0x68] sm:$0xff] %v618_v47  ;;  %v588_v54 = vmul.f32 %v523_v51, %v348_v30 }
  0xfe   : > { %v555_v32 = vsub.f32 %v459_v49, %v539_v52  ;;  %v619_v55 = vadd.f32 %v603_v24, %v587_v33  ;;  %v556_v56 = vsub.f32 %v460_v50, %v540_v53 }
  0xff   : > { %v620_v57 = vadd.f32 %v604_v25, %v588_v54 }
 0x100   : > { %571 = vst [vmem:[%s1364_s8 + $0x70] sm:$0xff] %v555_v32  ;;  %635 = vst [vmem:[%s1368_s9 + $0x70] sm:$0xff] %v619_v55 }
 0x101   : > { %572 = vst [vmem:[%s1364_s8 + $0x78] sm:$0xff] %v556_v56  ;;  %636 = vst [vmem:[%s1368_s9 + $0x78] sm:$0xff] %v620_v57 }
 0x102   : > { %1008 = shalt.err (!%p1005_p4)
}
 0x103   : > { %s1009_s1 = scalar_lea.hbm %s1438_s18, 2048  ;;  %s1013_s8 = scalar_lea.hbm %s1534_s3, 4096 }
 0x104   : > { %p1010_p7 = scmp.ne.s32.totalorder %s1438_s18, %s1009_s1  ;;  %p1014_p2 = scmp.lt.s32.totalorder %s1438_s18, %s1534_s3 }
 0x105   : > { %p1015_p8 = scmp.lt.s32.totalorder %s1013_s8, %s1009_s1 }
 0x106   : > { %p1011_p10 = pnand %p1010_p7, %p1199_p9 }
 0x107   : > { %p1016_p0 = por %p1015_p8, %p1014_p2 }
 0x108   : > { %p1012_p13 = pneg %p1011_p10 }
 0x10a   : > { %p1017_p1 = pnand %p1016_p0, %p1012_p13 }
 0x10c   : > { %1020 = shalt.err (!%p1017_p1)
}
 0x10d   : > { %s1119_s7 = smov 128   ;;  %s1120_s23 = smov 256  }
 0x10e   : > { %s1121_s22 = smov 8   ;;  %s643_s27 = scalar_lea.sflag [#allocation9], %s1262_s5 }
 0x10f   : > { %859 = dma.vmem_to_hbm [thread:$0]  (%p1199_p9), %s1444_s11, 2048, %s1438_s18, %s638_s26, %s1119_s7, %s1120_s23, %s1121_s22  }
 0x110   : > { %s1021_s10 = scalar_lea.vmem %s1452_s21, 2048  ;;  %s1122_s12 = smov [#allocation8]  }
 0x111   : > { %p1022_p3 = scmp.ne.s32.totalorder %s1452_s21, %s1021_s10  ;;  %s1025_s14 = sshll.u32 %s1122_s12, 4  ;;  %s1026_s14 = int_to_ptr.vmem [resolvable:$false] %s1025_s14 }
 0x112   : > { %s1027_s29 = scalar_lea.vmem %s1026_s14, 4096  ;;  %p1028_p4 = scmp.lt.s32.totalorder %s1452_s21, %s1026_s14 }
 0x113   : > { %p1023_p5 = pnand %p1022_p3, %p1199_p9  ;;  %p1029_p7 = scmp.lt.s32.totalorder %s1027_s29, %s1021_s10 }
 0x115   : > { %p1024_p6 = pneg %p1023_p5  ;;  %p1030_p10 = por %p1029_p7, %p1028_p4 }
 0x117   : > { %p1031_p13 = pnand %p1030_p10, %p1024_p6 }
 0x119   : > { %1034 = shalt.err (!%p1031_p13)
}
 0x11a   : > { %s1035_s11 = scalar_lea.hbm %s1450_s24, 2048  ;;  %s1039_s26 = scalar_lea.hbm %s1535_s4, 4096 }
 0x11b   : > { %p1036_p2 = scmp.ne.s32.totalorder %s1450_s24, %s1035_s11  ;;  %p1040_p1 = scmp.lt.s32.totalorder %s1450_s24, %s1535_s4 }
 0x11c   : > { %p1041_p3 = scmp.lt.s32.totalorder %s1039_s26, %s1035_s11 }
 0x11d   : > { %p1037_p8 = pnand %p1036_p2, %p1199_p9 }
 0x11e   : > { %p1042_p5 = por %p1041_p3, %p1040_p1 }
 0x11f   : > { %p1038_p0 = pneg %p1037_p8 }
 0x121   : > { %p1043_p6 = pnand %p1042_p5, %p1038_p0 }
 0x123   : > { %1046 = shalt.err (!%p1043_p6)
}
 0x124   : > { %860 = dma.vmem_to_hbm [thread:$0]  (%p1199_p9), %s1452_s21, 2048, %s1450_s24, %s643_s27, %s1119_s7, %s1120_s23, %s1121_s22  }
 0x125 PF: > { %s691_s25 = sand.u32 1, %s1089_s15   ;;  %p871_p4 = pnand %p839_p12, %p1206_p11 }
 0x126   : > { %s692_s8 = scalar_lea.sflag [#allocation4], %s691_s25 }
 0x127   : > { %p872_p7 = pneg %p871_p4 }
 0x129   : > { %1080 = dma.done.wait (%p872_p7), %s692_s8, 2048  }
 0x12a   : > { %1082 = vsyncadd (%p872_p7), %s692_s8, 4294965248  ;;  %s701_s9 = scalar_lea.sflag [#allocation9], %s691_s25 }
 0x12b   : > { %1084 = dma.done.wait (%p872_p7), %s701_s9, 2048  }
 0x12c   : > { %1086 = vsyncadd (%p872_p7), %s701_s9, 4294965248  ;;  %s27_s20 = sadd.s32 1, %s1109_s20   ;;  %s1547_s28 = sld [smem:[#allocation15_spill]] }
 0x12d   : > { %p24_p10 = scmp.ge.s32.totalorder %s27_s20, 4   ;;  %s1548_s21 = sld [smem:[#allocation14_spill]] }
 0x12e   : > { %s1549_s15 = smov %s1093_s16  ;;  %s1550_s16 = smov %s1097_s17 }
 0x12f   : > { %s1552_s18 = smov %s1105_s19  ;;  %26 = sbr.rel (!%p24_p10) target bundleno = 12 (0xc), region = 110 }
 0x132   : > { %s1551_s17 = smov %s1547_s28 }
 0x133   : > { %s1553_s19 = smov %s1548_s21 }
 0x134   :  { %706 = vsyncpa [#allocation3], 1 }
 0x135   :  { %708 = vsyncpa [#allocation3 + $0x1], 1 }
 0x136   :  { %709 = vsyncpa [#allocation6], 1 }
 0x137   :  { %711 = vsyncpa [#allocation6 + $0x1], 1 }
 0x138   :  { %712 = vsyncpa [#allocation4], 1 }
 0x139   :  { %714 = vsyncpa [#allocation4 + $0x1], 1 }
 0x13a   :  { %715 = vsyncpa [#allocation9], 1 }
 0x13b   :  { %717 = vsyncpa [#allocation9 + $0x1], 1 }

</bundles_post_ra>
